<compile_context>
chip_gen: v6e
topology: v6e:2x2x1
jax: 0.10.0
libtpu: 0.0.40
codegen_flags: <defaults>
</compile_context>

<pallas_src>
import functools

import jax
import jax.numpy as jnp
from jax import lax
from jax.experimental import pallas as pl
from jax.experimental.pallas import tpu as pltpu

_LANES = 128
_SUBLANES = 8
_TILE_TARGET_F32_BYTES = 2 * 1024 * 1024   # per-operand tile, budgeted at f32 width
_VMEM_LIMIT_BYTES = 32 * 1024 * 1024       # safe on v5e / v6e / v7x
_NUM_CORE_SPLITS = 2                       # leading "parallel" axis -> both TCs on v7x


def _round_up(a, b):
    return ((a + b - 1) // b) * b


def _wbce_kernel(x_ref, t_ref, pw_ref, nw_ref, o_ref, *,
                 tn, lanes, rows_valid, steps_per_core, need_mask, soft_targets):
    c = pl.program_id(0)          # core-split index ("parallel")
    i = pl.program_id(1)          # streaming step within this core ("arbitrary")

    # The (8, lanes) output block is resident across the whole "arbitrary" axis
    # and acts as this core's accumulator of partial sums.
    @pl.when(i == 0)
    def _init():
        o_ref[...] = jnp.zeros_like(o_ref)

    x = x_ref[...].astype(jnp.float32)     # (tn, lanes) predictions in (0, 1)
    t = t_ref[...].astype(jnp.float32)     # (tn, lanes) targets
    pw = pw_ref[...].astype(jnp.float32)   # (1, lanes) positive weights
    nw = nw_ref[...].astype(jnp.float32)   # (1, lanes) negative weights

    is_neg = t == 0.0
    w = jnp.where(is_neg, nw, pw)          # per-element weight (lane broadcast)

    if soft_targets:
        # General BCE, valid for soft targets.  NOTE: the clamp must stay
        # *before* the multiply so padded elements (x=1, t=1) give
        # 0 * (-100) == 0 rather than 0 * (-inf) == NaN.
        log_x = jnp.maximum(jnp.log(x), -100.0)
        log_1mx = jnp.maximum(jnp.log(1.0 - x), -100.0)
        loss = -w * (t * log_x + (1.0 - t) * log_1mx)
    else:
        # Hard-target fast path: a single log per element (half the EUP work,
        # fewer VALU ops).  Exactly equal to the general form for t in {0, 1}.
        p = jnp.where(is_neg, 1.0 - x, x)
        loss = -w * jnp.maximum(jnp.log(p), -100.0)

    if need_mask:
        # Rows past the real data (ragged last block / clamped excess steps)
        # hold garbage reads: zero them before accumulating.
        row0 = (c * steps_per_core + i) * tn
        local_row = lax.broadcasted_iota(jnp.int32, (tn, lanes), 0)
        loss = jnp.where(row0 + local_row < rows_valid, loss, 0.0)

    # Pure-VALU vreg adds into the (8, lanes) accumulator; the sublane and
    # cross-lane reductions are deferred to a tiny XLA reduce in the wrapper.
    o_ref[...] += jnp.sum(loss.reshape(tn // _SUBLANES, _SUBLANES, lanes), axis=0)


def weighted_bce_loss(inputs, targets, positive_weights, negative_weights,
                      *, soft_targets=False, tile_rows=None):
    """Weighted BCE with mean reduction.

    inputs, targets: (N, C); positive/negative_weights: (C,). Returns f32 scalar.
    soft_targets=False uses the single-log hard-target fast path (exact for
    targets in {0, 1}); pass True for the general two-log BCE form.
    """
    N, C = inputs.shape
    flat = N * C
    inv_count = 1.0 / float(flat)           # mean over the true (unpadded) elements

    pos_w = positive_weights.astype(jnp.float32)
    neg_w = negative_weights.astype(jnp.float32)

    if _LANES % C == 0:
        # Lane-dense path: flatten (N, C) -> (rows, 128); class of lane l is
        # l % C.  Pad only to the next multiple of 1024 elements (8 rows);
        # padding with x=1, t=1 contributes exactly 0 to the sum.
        reps = _LANES // C
        pw = jnp.tile(pos_w, reps).reshape(1, _LANES)
        nw = jnp.tile(neg_w, reps).reshape(1, _LANES)
        lanes = _LANES
        flat_padded = _round_up(flat, _SUBLANES * _LANES)
        rows_valid = flat_padded // _LANES
        pad = flat_padded - flat
        if pad:
            # TODO(synk): a fully pad-free tail (manual-DMA remainder handling)
            # would avoid this small relayout copy for awkward N*C.
            x2 = jnp.pad(inputs.reshape(-1), (0, pad), constant_values=1)
            t2 = jnp.pad(targets.reshape(-1), (0, pad), constant_values=1)
        else:
            x2 = inputs.reshape(-1)
            t2 = targets.reshape(-1)
        x2 = x2.reshape(rows_valid, _LANES)
        t2 = t2.reshape(rows_valid, _LANES)
    else:
        # TODO(synk): lane-pack awkward class counts (per-lane gathered weights)
        # instead of running with only C of 128 lanes active.
        pw = pos_w.reshape(1, C)
        nw = neg_w.reshape(1, C)
        lanes = C
        rows_valid = _round_up(N, _SUBLANES)
        if rows_valid != N:
            x2 = jnp.pad(inputs, ((0, rows_valid - N), (0, 0)), constant_values=1)
            t2 = jnp.pad(targets, ((0, rows_valid - N), (0, 0)), constant_values=1)
        else:
            x2, t2 = inputs, targets

    # Tile rows: budget against the f32 working set (all math is f32 whatever
    # the input dtype), with the lane dim padded to a full vreg width in VMEM.
    if tile_rows is None:
        vmem_lanes = _round_up(lanes, _LANES)
        budget_rows = _TILE_TARGET_F32_BYTES // (vmem_lanes * 4)
    else:
        budget_rows = tile_rows
    budget_rows = max(_SUBLANES, budget_rows // _SUBLANES * _SUBLANES)
    tn = min(budget_rows, rows_valid)       # both are multiples of 8

    total_steps = pl.cdiv(rows_valid, tn)
    num_cores = _NUM_CORE_SPLITS if total_steps >= _NUM_CORE_SPLITS else 1
    steps_per_core = pl.cdiv(total_steps, num_cores)
    # Blocks past the real data (ragged tail / excess per-core steps) are
    # masked inside the kernel instead of padding the arrays to a tile multiple.
    need_mask = (num_cores * steps_per_core * tn) > rows_valid
    last_block = total_steps - 1

    if num_cores * steps_per_core == total_steps:
        def data_map(c, i):
            return (c * steps_per_core + i, 0)
    else:
        def data_map(c, i):
            # Clamp excess steps onto the last real block (re-read, fully
            # masked in-kernel) so no DMA ever starts past the array end.
            return (jnp.minimum(c * steps_per_core + i, last_block), 0)

    kernel = functools.partial(
        _wbce_kernel, tn=tn, lanes=lanes, rows_valid=rows_valid,
        steps_per_core=steps_per_core, need_mask=need_mask,
        soft_targets=soft_targets)

    partials = pl.pallas_call(
        kernel,
        out_shape=jax.ShapeDtypeStruct((num_cores * _SUBLANES, lanes), jnp.float32),
        grid_spec=pltpu.PrefetchScalarGridSpec(
            num_scalar_prefetch=0,
            grid=(num_cores, steps_per_core),
            in_specs=[
                pl.BlockSpec((tn, lanes), data_map),
                pl.BlockSpec((tn, lanes), data_map),
                pl.BlockSpec((1, lanes), lambda c, i: (0, 0)),
                pl.BlockSpec((1, lanes), lambda c, i: (0, 0)),
            ],
            out_specs=pl.BlockSpec((_SUBLANES, lanes), lambda c, i: (c, 0)),
        ),
        compiler_params=pltpu.CompilerParams(
            dimension_semantics=("parallel", "arbitrary"),
            vmem_limit_bytes=_VMEM_LIMIT_BYTES,
        ),
    )(x2, t2, pw, nw)

    # Tiny XLA reduce over (num_cores*8, lanes) partial sums + mean normalize.
    return jnp.sum(partials) * inv_count


def _reference(inputs, targets, positive_weights, negative_weights):
    w = jnp.where(targets == 0.0, negative_weights[None, :], positive_weights[None, :])
    log_x = jnp.maximum(jnp.log(inputs), -100.0)
    log_1mx = jnp.maximum(jnp.log(1.0 - inputs), -100.0)
    loss = -w * (targets * log_x + (1.0 - targets) * log_1mx)
    return jnp.mean(loss)


if __name__ == "__main__":
    key = jax.random.PRNGKey(0)
    k1, k2, k3, k4 = jax.random.split(key, 4)

    # Case 1: batch=8, num_classes=4 (lane-dense path, single tile).
    N, C = 8, 4
    inputs = jax.nn.sigmoid(jax.random.normal(k1, (N, C), dtype=jnp.float32))
    targets = (jax.random.uniform(k2, (N, C)) > 0.5).astype(jnp.float32)
    positive_weights = jnp.array([1.5, 2.0, 0.5, 3.0], dtype=jnp.float32)
    negative_weights = jnp.array([0.8, 1.0, 1.2, 0.6], dtype=jnp.float32)

    loss = jax.block_until_ready(
        weighted_bce_loss(inputs, targets, positive_weights, negative_weights))
    ref = _reference(inputs, targets, positive_weights, negative_weights)
    assert jnp.allclose(loss, ref, rtol=1e-4, atol=1e-6), (loss, ref)

    # Same data through the general soft-target (two-log) path.
    loss_soft = jax.block_until_ready(
        weighted_bce_loss(inputs, targets, positive_weights, negative_weights,
                          soft_targets=True))
    assert jnp.allclose(loss_soft, ref, rtol=1e-4, atol=1e-6), (loss_soft, ref)

    # Case 2: ragged tiles + dual-core split + clamped index map (tiny tile
    # override so a small shape still exercises the multi-step/multi-core grid).
    N2 = 600
    inputs2 = jax.nn.sigmoid(jax.random.normal(k3, (N2, C), dtype=jnp.float32))
    targets2 = (jax.random.uniform(k4, (N2, C)) > 0.5).astype(jnp.float32)
    loss2 = jax.block_until_ready(
        weighted_bce_loss(inputs2, targets2, positive_weights, negative_weights,
                          tile_rows=8))
    ref2 = _reference(inputs2, targets2, positive_weights, negative_weights)
    assert jnp.allclose(loss2, ref2, rtol=1e-4, atol=1e-6), (loss2, ref2)

    # Case 3: class count that does not divide 128 (fallback path).
    C3 = 3
    pw3 = jnp.array([1.5, 2.0, 0.5], dtype=jnp.float32)
    nw3 = jnp.array([0.8, 1.0, 1.2], dtype=jnp.float32)
    inputs3 = jax.nn.sigmoid(jax.random.normal(k1, (16, C3), dtype=jnp.float32))
    targets3 = (jax.random.uniform(k2, (16, C3)) > 0.5).astype(jnp.float32)
    loss3 = jax.block_until_ready(weighted_bce_loss(inputs3, targets3, pw3, nw3))
    ref3 = _reference(inputs3, targets3, pw3, nw3)
    assert jnp.allclose(loss3, ref3, rtol=1e-4, atol=1e-6), (loss3, ref3)

    print("KERNEL_OK")
</pallas_src>

<mosaic_0001>
module attributes {stable_mosaic.version = 11 : i64} {
  func.func @_wbce_kernel(%arg0: i32, %arg1: i32, %arg2: memref<8x128xf32, #tpu.memory_space<vmem>>, %arg3: memref<8x128xf32, #tpu.memory_space<vmem>>, %arg4: memref<1x128xf32, #tpu.memory_space<vmem>>, %arg5: memref<1x128xf32, #tpu.memory_space<vmem>>, %arg6: memref<8x128xf32, #tpu.memory_space<vmem>>) attributes {dimension_semantics = [#tpu.dimension_semantics<parallel>, #tpu.dimension_semantics<arbitrary>], iteration_bounds = array<i64: 1, 1>, scalar_prefetch = 0 : i64, scratch_operands = 0 : i64, tpu.core_type = #tpu.core_type<tc>, window_params = [{transform_indices = @transform_0, window_bounds = array<i64: 8, 128>}, {transform_indices = @transform_1, window_bounds = array<i64: 8, 128>}, {pipeline_mode = #tpu.pipeline_mode<synchronous>, transform_indices = @transform_2, window_bounds = array<i64: 1, 128>}, {pipeline_mode = #tpu.pipeline_mode<synchronous>, transform_indices = @transform_3, window_bounds = array<i64: 1, 128>}, {transform_indices = @transform_4, window_bounds = array<i64: 8, 128>}]} {
    %c0_i32 = arith.constant 0 : i32
    %0 = arith.cmpi eq, %arg1, %c0_i32 : i32
    %1 = arith.extui %0 : i1 to i32
    %c0_i32_0 = arith.constant 0 : i32
    %2 = arith.cmpi ne, %1, %c0_i32_0 : i32
    scf.if %2 {
      %cst_16 = arith.constant 0.000000e+00 : f32
      %28 = vector.broadcast %cst_16 : f32 to vector<8x128xf32>
      %c0_17 = arith.constant 0 : index
      %c0_18 = arith.constant 0 : index
      %29 = vector.load %arg6[%c0_17, %c0_18] : memref<8x128xf32, #tpu.memory_space<vmem>>, vector<8x128xf32>
      tpu.vector_store %arg6[%c0_17, %c0_18], %28 {strides = array<i32>} : memref<8x128xf32, #tpu.memory_space<vmem>>, vector<8x128xf32>,
    } else {
    }
    %c0 = arith.constant 0 : index
    %c0_1 = arith.constant 0 : index
    %3 = vector.load %arg2[%c0, %c0_1] : memref<8x128xf32, #tpu.memory_space<vmem>>, vector<8x128xf32>
    %c0_2 = arith.constant 0 : index
    %c0_3 = arith.constant 0 : index
    %4 = vector.load %arg3[%c0_2, %c0_3] : memref<8x128xf32, #tpu.memory_space<vmem>>, vector<8x128xf32>
    %c0_4 = arith.constant 0 : index
    %c0_5 = arith.constant 0 : index
    %5 = vector.load %arg4[%c0_4, %c0_5] : memref<1x128xf32, #tpu.memory_space<vmem>>, vector<1x128xf32>
    %c0_6 = arith.constant 0 : index
    %c0_7 = arith.constant 0 : index
    %6 = vector.load %arg5[%c0_6, %c0_7] : memref<1x128xf32, #tpu.memory_space<vmem>>, vector<1x128xf32>
    %cst = arith.constant 0.000000e+00 : f32
    %7 = vector.broadcast %cst : f32 to vector<8x128xf32>
    %8 = arith.cmpf oeq, %4, %7 : vector<8x128xf32>
    %9 = vector.shape_cast %6 : vector<1x128xf32> to vector<1x128xf32>
    %10 = vector.broadcast %9 : vector<1x128xf32> to vector<8x128xf32>
    %11 = vector.shape_cast %5 : vector<1x128xf32> to vector<1x128xf32>
    %12 = vector.broadcast %11 : vector<1x128xf32> to vector<8x128xf32>
    %13 = arith.select %8, %10, %12 : vector<8x128xi1>, vector<8x128xf32>
    %cst_8 = arith.constant 1.000000e+00 : f32
    %14 = vector.broadcast %cst_8 : f32 to vector<8x128xf32>
    %15 = arith.subf %14, %3 : vector<8x128xf32>
    %16 = arith.select %8, %15, %3 : vector<8x128xi1>, vector<8x128xf32>
    %cst_9 = arith.constant 0.000000e+00 : f32
    %17 = vector.broadcast %cst_9 : f32 to vector<8x128xf32>
    %18 = arith.subf %17, %13 : vector<8x128xf32>
    %19 = math.log %16 : vector<8x128xf32>
    %cst_10 = arith.constant -1.000000e+02 : f32
    %20 = vector.broadcast %cst_10 : f32 to vector<8x128xf32>
    %21 = arith.maximumf %19, %20 : vector<8x128xf32>
    %22 = arith.mulf %18, %21 : vector<8x128xf32>
    %c0_11 = arith.constant 0 : index
    %c0_12 = arith.constant 0 : index
    %23 = vector.load %arg6[%c0_11, %c0_12] : memref<8x128xf32, #tpu.memory_space<vmem>>, vector<8x128xf32>
    %24 = vector.shape_cast %22 : vector<8x128xf32> to vector<1x8x128xf32>
    %cst_13 = arith.constant dense<0.000000e+00> : vector<8x128xf32>
    %25 = vector.multi_reduction <add>, %24, %cst_13 [0] : vector<1x8x128xf32> to vector<8x128xf32>
    %26 = arith.addf %23, %25 : vector<8x128xf32>
    %c0_14 = arith.constant 0 : index
    %c0_15 = arith.constant 0 : index
    %27 = vector.load %arg6[%c0_14, %c0_15] : memref<8x128xf32, #tpu.memory_space<vmem>>, vector<8x128xf32>
    tpu.vector_store %arg6[%c0_14, %c0_15], %26 {strides = array<i32>} : memref<8x128xf32, #tpu.memory_space<vmem>>, vector<8x128xf32>,
    return
  }
  func.func @transform_0(%arg0: i32, %arg1: i32) -> (i32, i32) {
    %c1_i32 = arith.constant 1 : i32
    %0 = arith.muli %arg0, %c1_i32 : i32
    %1 = arith.addi %0, %arg1 : i32
    %c0_i32 = arith.constant 0 : i32
    %c0_i32_0 = arith.constant 0 : i32
    return %1, %c0_i32 : i32, i32
  }
  func.func @transform_1(%arg0: i32, %arg1: i32) -> (i32, i32) {
    %c1_i32 = arith.constant 1 : i32
    %0 = arith.muli %arg0, %c1_i32 : i32
    %1 = arith.addi %0, %arg1 : i32
    %c0_i32 = arith.constant 0 : i32
    %c0_i32_0 = arith.constant 0 : i32
    return %1, %c0_i32 : i32, i32
  }
  func.func @transform_2(%arg0: i32, %arg1: i32) -> (i32, i32) {
    %c0_i32 = arith.constant 0 : i32
    %c0_i32_0 = arith.constant 0 : i32
    %c0_i32_1 = arith.constant 0 : i32
    return %c0_i32, %c0_i32_0 : i32, i32
  }
  func.func @transform_3(%arg0: i32, %arg1: i32) -> (i32, i32) {
    %c0_i32 = arith.constant 0 : i32
    %c0_i32_0 = arith.constant 0 : i32
    %c0_i32_1 = arith.constant 0 : i32
    return %c0_i32, %c0_i32_0 : i32, i32
  }
  func.func @transform_4(%arg0: i32, %arg1: i32) -> (i32, i32) {
    %c0_i32 = arith.constant 0 : i32
    %c0_i32_0 = arith.constant 0 : i32
    return %arg0, %c0_i32 : i32, i32
  }
}

</mosaic_0001>

<bundles_post_ra>
// kernel: tpu_custom_call.1
= control target key start
LH: loop header
LB: loop body
LE: loop exit
PB: predicated region body
PF: predicated region fallthrough
CT: control target
= control target key end

     0   :  { %9 = vsyncpa [#allocation3], 0  ;;  %s217_s0 = inlined_call_operand.hbm [shape: f32[8,128], index: 0, kind: input, shape index: {}]   ;;  %s218_s1 = inlined_call_operand.hbm [shape: f32[8,128], index: 1, kind: input, shape index: {}]   ;;  %s219_s2 = inlined_call_operand.vmem [shape: f32[1,128], index: 2, kind: input, shape index: {}]   ;;  %s220_s3 = inlined_call_operand.vmem [shape: f32[1,128], index: 3, kind: input, shape index: {}]   ;;  %s221_s4 = inlined_call_operand.hbm [shape: f32[8,128], index: 4, kind: output, shape index: {}]  }
   0x1   :  { %10 = vsyncpa [#allocation6], 0 }
   0x2   :  { %11 = vsyncpa [#allocation4], 0  ;;  %s174_s15 = smov [#allocation2]   ;;  %s175_s17 = smov [#allocation5]  }
   0x3   :  { %s21_s16 = sshll.u32 %s174_s15, 4  ;;  %s34_s18 = sshll.u32 %s175_s17, 4  ;;  %s22_s16 = int_to_ptr.vmem [resolvable:$true] %s21_s16  ;;  %s35_s18 = int_to_ptr.vmem [resolvable:$true] %s34_s18 }
   0x4   :  { %s116_s19 = scalar_lea.vmem %s22_s16, 128  ;;  %p121_p1 = scmp.lt.s32.totalorder %s22_s16, %s22_s16 }
   0x5   :  { %p117_p0 = scmp.ne.s32.totalorder %s22_s16, %s116_s19  ;;  %p122_p2 = scmp.lt.s32.totalorder %s116_s19, %s116_s19 }
   0x7   :  { %p123_p3 = por %p122_p2, %p121_p1 }
   0x9   :  { %p124_p4 = pnand %p123_p3, %p117_p0 }
   0xb   :  { %127 = shalt.err (!%p124_p4)
}
   0xc   :  { %24 = dma.hbm_to_vmem [thread:$0]  %s217_s0, 128, %s22_s16, [#allocation3]  }
   0xd   :  { %s136_s22 = scalar_lea.vmem %s35_s18, 128  ;;  %p141_p6 = scmp.lt.s32.totalorder %s35_s18, %s35_s18 }
   0xe   :  { %p137_p5 = scmp.ne.s32.totalorder %s35_s18, %s136_s22  ;;  %p142_p7 = scmp.lt.s32.totalorder %s136_s22, %s136_s22 }
  0x10   :  { %p143_p8 = por %p142_p7, %p141_p6 }
  0x12   :  { %p144_p9 = pnand %p143_p8, %p137_p5 }
  0x14   :  { %147 = shalt.err (!%p144_p9)
}
  0x15   :  { %37 = dma.hbm_to_vmem [thread:$0]  %s218_s1, 128, %s35_s18, [#allocation6]  }
  0x16   :  { %168 = dma.done.wait [#allocation3], 128  }
  0x17   :  { %169 = vsyncadd [#allocation3], 4294967168 }
  0x18   :  { %170 = dma.done.wait [#allocation6], 128  }
  0x19   :  { %171 = vsyncadd [#allocation6], 4294967168  ;;  %v55_v0 = vld [vmem:[#allocation2] sm:$0xff]  ;;  %v56_v1 = vld [vmem:[#allocation5] sm:$0xff]  ;;  %s176_s1 = smov [#allocation7]  }
  0x1a   :  { %vm59_vm0 = vcmp.eq.f32.partialorder %v56_v1, 0.0  ;;  %v73_v2 = vsub.f32 1.0, %v55_v0  ;;  %v101_v4 = vld [vmem:[%s219_s2] ss:$0 sm:$0xff]  ;;  %s90_s28 = sshll.u32 %s176_s1, 4  ;;  %s91_s28 = int_to_ptr.vmem [resolvable:$true] %s90_s28 }
  0x1b   :  { %v100_v5 = vld [vmem:[%s220_s3] ss:$0 sm:$0xff]  ;;  %s148_s29 = scalar_lea.vmem %s91_s28, 128  ;;  %p153_p11 = scmp.lt.s32.totalorder %s91_s28, %s91_s28 }
  0x1c   :  { %v74_v3 = vsel %vm59_vm0, %v73_v2, %v55_v0  ;;  %v72_v6 = vsel %vm59_vm0, %v100_v5, %v101_v4  ;;  %p149_p10 = scmp.ne.s32.totalorder %s91_s28, %s148_s29  ;;  %p154_p12 = scmp.lt.s32.totalorder %s148_s29, %s148_s29 }
  0x1d   :  { %106 = vlog2.f32 %v74_v3  ;;  %v75_v8 = vsub.f32 0.0, %v72_v6 }
  0x1e   :  { %p155_p13 = por %p154_p12, %p153_p11 }
  0x20   :  { %p156_p0 = pnand %p155_p13, %p149_p10 }
  0x2a   :  { %v107_v7 = vpop.eup %106 }
  0x2b   :  { %v77_v9 = vmul.f32 0.6931472, %v107_v7 }
  0x2d   :  { %v78_v10 = vmax.f32 %v77_v9, -100.0 }
  0x2f   :  { %v79_v11 = vmul.f32 %v78_v10, %v75_v8 }
  0x31   :  { %83 = vst [vmem:[#allocation7] sm:$0xff] %v79_v11 }
  0x32   :  { %159 = shalt.err (!%p156_p0)
}
  0x33   :  { %93 = dma.vmem_to_hbm [thread:$0]  %s91_s28, 128, %s221_s4, [#allocation4]  }
  0x34   :  { %172 = dma.done.wait [#allocation4], 128  }
  0x35   :  { %173 = vsyncadd [#allocation4], 4294967168 }
  0x36   :  { %97 = vsyncpa [#allocation3], 1 }
  0x37   :  { %98 = vsyncpa [#allocation6], 1 }
  0x38   :  { %99 = vsyncpa [#allocation4], 1 }

</bundles_post_ra>
